<compile_context>
chip_gen: v5e
topology: v5e:2x2
jax: 0.10.0
libtpu: 0.0.40
codegen_flags: <defaults>
</compile_context>

<pallas_src>
import math
import jax
import jax.numpy as jnp
from jax.experimental import pallas as pl
from jax.experimental.pallas import tpu as pltpu

NEG_SLOPE = 0.01        # F.leaky_relu default slope
MASK_VAL = -1e9


# --------------------------------------------------------------------------- #
# Kernel 1: fused projection  (runs once over the node axis)
# --------------------------------------------------------------------------- #
def proj_kernel(h_ref, w_ref, z_ref, e_ref):
    # h_ref : (TQ, in)            bf16
    # w_ref : (in, H*out + 2H)    bf16   [W_all | W^T a_src | W^T a_dst]
    # z_ref : (TQ, H*out)         bf16   fc outputs of all heads, concatenated
    # e_ref : (TQ, 2H)            f32    [src attn logits | dst attn logits]
    ho = z_ref.shape[1]
    res = jnp.dot(h_ref[...], w_ref[...], preferred_element_type=jnp.float32)
    z_ref[...] = res[:, :ho].astype(z_ref.dtype)
    e_ref[...] = res[:, ho:]


# --------------------------------------------------------------------------- #
# Kernel 2: masked edge-softmax + aggregation (the only O(N^2) work)
# --------------------------------------------------------------------------- #
def gat_kernel(z_ref, esrc_ref, edst_ref, mask_ref, o_ref):
    # z_ref    : (N,  H*out)   bf16   z of every source node (grid-invariant)
    # esrc_ref : (H,  N)       f32    src-side attention logits (grid-invariant)
    # edst_ref : (TQ, H)       f32    dst-side attention logits of this dst tile
    # mask_ref : (TQ, N)       int8   mask[dst, src] != 0  <=>  edge src->dst
    # o_ref    : (TQ, H*out)   f32    concatenated per-head outputs
    z_all = z_ref[...]
    e_src = esrc_ref[...]
    e_dst = edst_ref[...]
    edge = mask_ref[...] != 0                          # [TQ, N] bool

    num_heads = esrc_ref.shape[0]
    out_dim = z_ref.shape[1] // num_heads

    # TODO(synk): for very large graphs add a src-axis ("arbitrary") grid dim with an
    # online (flash-style) softmax + running m/l/acc scratch, and run the score math
    # in bf16 on v6e/v7x (keep max/sum/exp handling in f32).
    outs = []
    for hd in range(num_heads):
        # e[j, i] = a_dst.z_j + a_src.z_i  (raw logit for edge i -> j)
        s = e_dst[:, hd:hd + 1] + e_src[hd:hd + 1, :]  # [TQ, N] f32
        s = jnp.maximum(s, NEG_SLOPE * s)              # leaky_relu, 1 VPU op
        s = jnp.where(edge, s, MASK_VAL)               # single select for the mask

        # softmax over incoming edges (src axis); normalization deferred past the MXU
        m = jnp.max(s, axis=1, keepdims=True)
        p = jnp.exp(s - m)
        denom = jnp.sum(p, axis=1, keepdims=True)

        z_h = z_all[:, hd * out_dim:(hd + 1) * out_dim]
        out_h = jnp.dot(p.astype(jnp.bfloat16), z_h,
                        preferred_element_type=jnp.float32)
        # deferred normalization: TQ x out_dim multiplies (EUP reciprocal)
        outs.append(out_h * pl.reciprocal(denom, approx=True))

    # Single lane-dense store in the concatenated ('cat' merge) layout.
    o_ref[...] = jnp.concatenate(outs, axis=1).astype(o_ref.dtype)


# --------------------------------------------------------------------------- #
# Host-side wrapper
# --------------------------------------------------------------------------- #
def _dst_tile(n, cap=512):
    """Dst-node tile: multiple of 8 sublanes, >=2 tiles whenever possible so the
    'parallel' axis shards across v7x's 2 TensorCores, capped to bound the
    [TQ, N] softmax intermediates (larger tiles amortize per-step overhead)."""
    if n <= 8:
        return n
    half = -(-n // 2)                 # ceil(n/2)
    tq = -(-half // 8) * 8            # round up to a sublane multiple
    return max(8, min(tq, cap, n))


def _vmem_limit_bytes(n, tq, num_heads, out_dim, in_dim):
    """Explicit scoped-VMEM budget (instead of relying on chip defaults)."""
    ho = num_heads * out_dim
    width = ho + 2 * num_heads
    resident = n * ho * 2 + num_heads * n * 4 + in_dim * width * 2
    per_tile = tq * (num_heads * 4 + n + ho * 4 + in_dim * 2 + width * 4)
    interm = 8 * tq * n * 4                    # softmax temporaries, headroom
    need = 2 * (resident + per_tile) + interm  # default double-buffering
    return int(min(max(need, 32 * 1024 * 1024), 64 * 1024 * 1024))


def multi_head_gat(h, W, A, adj_mask):
    """h: [N, in] f32, W: [H, out, in] f32 (nn.Linear layout),
       A: [H, 1, 2*out] f32 (attn_fc layout),
       adj_mask: [N, N] int8, adj_mask[dst, src] != 0 iff edge src -> dst.
       Returns [N, H*out] f32 (== torch.cat(head_outs, dim=1))."""
    num_heads, out_dim, in_dim = W.shape
    n = h.shape[0]
    ho = num_heads * out_dim
    width = ho + 2 * num_heads

    # ---- host-side weight fusion (tiny, O(H*in*out)) ----
    a_src = A[:, 0, :out_dim]                                   # [H, out]
    a_dst = A[:, 0, out_dim:]                                   # [H, out]
    w_all = jnp.transpose(W, (2, 0, 1)).reshape(in_dim, ho)     # [in, H*out]
    # fused attention projections: a . (W_h h) == (W_h^T a) . h
    w_src = jnp.einsum('hoi,ho->ih', W, a_src)                  # [in, H]
    w_dst = jnp.einsum('hoi,ho->ih', W, a_dst)                  # [in, H]
    w_big = jnp.concatenate([w_all, w_src, w_dst], axis=1).astype(jnp.bfloat16)
    h_bf = h.astype(jnp.bfloat16)

    tq = _dst_tile(n)
    grid = (pl.cdiv(n, tq),)
    vmem_limit = _vmem_limit_bytes(n, tq, num_heads, out_dim, in_dim)

    # ---- kernel 1: one fused projection matmul over all nodes / heads ----
    z_all, e_all = pl.pallas_call(
        proj_kernel,
        out_shape=(jax.ShapeDtypeStruct((n, ho), jnp.bfloat16),
                   jax.ShapeDtypeStruct((n, 2 * num_heads), jnp.float32)),
        grid_spec=pltpu.PrefetchScalarGridSpec(
            num_scalar_prefetch=0,
            grid=grid,
            in_specs=[
                pl.BlockSpec((tq, in_dim), lambda i: (i, 0)),      # h rows
                pl.BlockSpec((in_dim, width), lambda i: (0, 0)),   # fused weights
            ],
            out_specs=[
                pl.BlockSpec((tq, ho), lambda i: (i, 0)),
                pl.BlockSpec((tq, 2 * num_heads), lambda i: (i, 0)),
            ]),
        compiler_params=pltpu.CompilerParams(
            dimension_semantics=("parallel",),
            vmem_limit_bytes=vmem_limit),
    )(h_bf, w_big)

    e_src = jnp.transpose(e_all[:, :num_heads])      # [H, N] f32 (tiny)
    e_dst = e_all[:, num_heads:]                     # [N, H] f32

    # ---- kernel 2: masked softmax + aggregation, tiled over dst nodes ----
    return pl.pallas_call(
        gat_kernel,
        out_shape=jax.ShapeDtypeStruct((n, ho), jnp.float32),
        grid_spec=pltpu.PrefetchScalarGridSpec(
            num_scalar_prefetch=0,
            grid=grid,
            in_specs=[
                pl.BlockSpec((n, ho), lambda i: (0, 0)),               # z (all src)
                pl.BlockSpec((num_heads, n), lambda i: (0, 0)),        # e_src
                pl.BlockSpec((tq, num_heads), lambda i: (i, 0)),       # e_dst tile
                pl.BlockSpec((tq, n), lambda i: (i, 0)),               # int8 mask tile
            ],
            out_specs=pl.BlockSpec((tq, ho), lambda i: (i, 0))),
        compiler_params=pltpu.CompilerParams(
            dimension_semantics=("parallel",),
            vmem_limit_bytes=vmem_limit),
    )(z_all, e_src, e_dst, adj_mask)


def multi_head_gat_ref(h, W, A, adj_mask):
    """Pure-JAX f32 reference for correctness checking."""
    mask = adj_mask != 0
    outs = []
    for hd in range(W.shape[0]):
        z = h @ W[hd].T
        d = z.shape[1]
        a_src, a_dst = A[hd, 0, :d], A[hd, 0, d:]
        s = (z @ a_dst)[:, None] + (z @ a_src)[None, :]
        s = jnp.where(s >= 0, s, NEG_SLOPE * s)
        s = jnp.where(mask, s, MASK_VAL)
        alpha = jax.nn.softmax(s, axis=1)
        outs.append(alpha @ z)
    return jnp.concatenate(outs, axis=1)


if __name__ == "__main__":
    N, IN_DIM, OUT_DIM, NUM_HEADS = 16, 8, 8, 4

    key = jax.random.PRNGKey(0)
    k_h, k_w, k_a, k_adj = jax.random.split(key, 4)

    # node features
    h = jax.random.normal(k_h, (N, IN_DIM), dtype=jnp.float32)

    # deterministic graph: self-loops + ring + a few random extra edges
    # adj[dst, src] = 1.0 if edge src -> dst
    adj = jnp.eye(N, dtype=jnp.float32)
    adj = adj.at[(jnp.arange(N) + 1) % N, jnp.arange(N)].set(1.0)
    extra = (jax.random.uniform(k_adj, (N, N)) < 0.2).astype(jnp.float32)
    adj = jnp.clip(adj + extra, 0.0, 1.0)
    adj_mask = (adj > 0).astype(jnp.int8)

    # every dst node needs >= 1 incoming edge (self-loops guarantee it);
    # otherwise edge-softmax over an empty set is undefined in DGL.
    assert bool(jnp.all(adj_mask.sum(axis=1) > 0))

    # xavier_normal_ with gain = calculate_gain('relu') = sqrt(2)
    gain = math.sqrt(2.0)
    std_fc = gain * math.sqrt(2.0 / (IN_DIM + OUT_DIM))
    std_attn = gain * math.sqrt(2.0 / (2 * OUT_DIM + 1))
    W = std_fc * jax.random.normal(k_w, (NUM_HEADS, OUT_DIM, IN_DIM), dtype=jnp.float32)
    A = std_attn * jax.random.normal(k_a, (NUM_HEADS, 1, 2 * OUT_DIM), dtype=jnp.float32)

    out = jax.block_until_ready(multi_head_gat(h, W, A, adj_mask))
    ref = multi_head_gat_ref(h, W, A, adj_mask)

    assert out.shape == (N, NUM_HEADS * OUT_DIM)
    assert bool(jnp.all(jnp.isfinite(out)))
    # bf16 MXU operands + approx reciprocal -> relaxed tolerance vs f32 reference
    # (NOTE: if used for training, verify this softmax precision is acceptable)
    assert jnp.allclose(out, ref, atol=5e-2, rtol=5e-2), \
        float(jnp.max(jnp.abs(out - ref)))
    print("KERNEL_OK")
</pallas_src>

<mosaic_0001>
module attributes {stable_mosaic.version = 11 : i64} {
  func.func @proj_kernel(%arg0: i32, %arg1: memref<8x8xbf16, #tpu.memory_space<vmem>>, %arg2: memref<8x40xbf16, #tpu.memory_space<vmem>>, %arg3: memref<8x32xbf16, #tpu.memory_space<vmem>>, %arg4: memref<8x8xf32, #tpu.memory_space<vmem>>) attributes {dimension_semantics = [#tpu.dimension_semantics<parallel>], iteration_bounds = array<i64: 2>, scalar_prefetch = 0 : i64, scratch_operands = 0 : i64, tpu.core_type = #tpu.core_type<tc>, window_params = [{transform_indices = @transform_0, window_bounds = array<i64: 8, 8>}, {pipeline_mode = #tpu.pipeline_mode<synchronous>, transform_indices = @transform_1, window_bounds = array<i64: 8, 40>}, {transform_indices = @transform_2, window_bounds = array<i64: 8, 32>}, {transform_indices = @transform_3, window_bounds = array<i64: 8, 8>}]} {
    %c0 = arith.constant 0 : index
    %c0_0 = arith.constant 0 : index
    %0 = vector.load %arg1[%c0, %c0_0] : memref<8x8xbf16, #tpu.memory_space<vmem>>, vector<8x8xbf16>
    %c0_1 = arith.constant 0 : index
    %c0_2 = arith.constant 0 : index
    %1 = vector.load %arg2[%c0_1, %c0_2] : memref<8x40xbf16, #tpu.memory_space<vmem>>, vector<8x40xbf16>
    %cst = arith.constant dense<0.000000e+00> : vector<8x40xf32>
    %2 = tpu.matmul %0, %1, %cst {dimension_numbers = #tpu.dot_dimension_numbers<[1], [0], [0], [1], [0, 0, 1, 1], [], []>} : vector<8x8xbf16>, vector<8x40xbf16>, vector<8x40xf32> -> vector<8x40xf32>
    %3 = vector.extract_strided_slice %2 {offsets = [0, 0], sizes = [8, 32], strides = [1, 1]} : vector<8x40xf32> to vector<8x32xf32>
    %4 = arith.truncf %3 : vector<8x32xf32> to vector<8x32xbf16>
    %c0_3 = arith.constant 0 : index
    %c0_4 = arith.constant 0 : index
    %5 = vector.load %arg3[%c0_3, %c0_4] : memref<8x32xbf16, #tpu.memory_space<vmem>>, vector<8x32xbf16>
    tpu.vector_store %arg3[%c0_3, %c0_4], %4 {strides = array<i32>} : memref<8x32xbf16, #tpu.memory_space<vmem>>, vector<8x32xbf16>,
    %6 = vector.extract_strided_slice %2 {offsets = [0, 32], sizes = [8, 8], strides = [1, 1]} : vector<8x40xf32> to vector<8x8xf32>
    %c0_5 = arith.constant 0 : index
    %c0_6 = arith.constant 0 : index
    %7 = vector.load %arg4[%c0_5, %c0_6] : memref<8x8xf32, #tpu.memory_space<vmem>>, vector<8x8xf32>
    tpu.vector_store %arg4[%c0_5, %c0_6], %6 {strides = array<i32>} : memref<8x8xf32, #tpu.memory_space<vmem>>, vector<8x8xf32>,
    return
  }
  func.func @transform_0(%arg0: i32) -> (i32, i32) {
    %c0_i32 = arith.constant 0 : i32
    %c0_i32_0 = arith.constant 0 : i32
    return %arg0, %c0_i32 : i32, i32
  }
  func.func @transform_1(%arg0: i32) -> (i32, i32) {
    %c0_i32 = arith.constant 0 : i32
    %c0_i32_0 = arith.constant 0 : i32
    %c0_i32_1 = arith.constant 0 : i32
    return %c0_i32, %c0_i32_0 : i32, i32
  }
  func.func @transform_2(%arg0: i32) -> (i32, i32) {
    %c0_i32 = arith.constant 0 : i32
    %c0_i32_0 = arith.constant 0 : i32
    return %arg0, %c0_i32 : i32, i32
  }
  func.func @transform_3(%arg0: i32) -> (i32, i32) {
    %c0_i32 = arith.constant 0 : i32
    %c0_i32_0 = arith.constant 0 : i32
    return %arg0, %c0_i32 : i32, i32
  }
}

</mosaic_0001>

<bundles_post_ra>
// kernel: tpu_custom_call.1
= control target key start
LH: loop header
LB: loop body
LE: loop exit
PB: predicated region body
PF: predicated region fallthrough
CT: control target
= control target key end

     0   :  { %9 = vsyncpa [#allocation3], 0  ;;  %s549_s0 = inlined_call_operand.vmem [shape: bf16[16,8], index: 0, kind: input, shape index: {}]   ;;  %s550_s1 = inlined_call_operand.vmem [shape: bf16[8,40], index: 1, kind: input, shape index: {}]   ;;  %s551_s2 = inlined_call_operand.hbm [shape: bf16[16,32], index: 2, kind: output, shape index: {0}]   ;;  %s552_s3 = inlined_call_operand.vmem [shape: f32[16,8], index: 3, kind: output, shape index: {1}]  }
   0x1   :  { %11 = vsyncpa [#allocation3 + $0x1], 0  ;;  %s452_s12 = smov 0   ;;  %s454_s13 = smov 0  }
   0x2   :  { %s456_s14 = smov 0   ;;  %s458_s15 = smov 0  }
   0x3 LB: > { %s473_s16 = sadd.s32 4294967295, %s429_s15   ;;  %s315_s17 = sadd.s32 4294967294, %s429_s15   ;;  %s429_s15 = sphi %s458_s15, %s558_s15   ;;  %s425_s14 = sphi %s456_s14, %s557_s14   ;;  %s421_s13 = sphi %s454_s13, %s556_s13   ;;  %s417_s12 = sphi %s452_s12, %s555_s12  }
   0x4   : > { %s477_s18 = sadd.s32 1, %s429_s15   ;;  %s71_s19 = sadd.s32 1, %s425_s14 }
   0x5   : > { %s68_s20 = ssub.s32 %s429_s15, %s477_s18  ;;  %p81_p0 = scmp.ne.s32.totalorder %s425_s14, %s421_s13 }
   0x6   : > { %p69_p1 = scmp.eq.s32.totalorder %s68_s20, 0  ;;  %p82_p2 = scmp.eq.s32.totalorder %s473_s16, 1 }
   0x7   : > { %p87_p3 = scmp.ne.s32.totalorder %s421_s13, %s417_s12  ;;  %p88_p4 = scmp.eq.s32.totalorder %s315_s17, 1 }
   0x8   : > { %s488_s21 = scalar_select %p69_p1, %s425_s14, %s71_s19  }
   0x9   : > { %p490_p5 = por %p82_p2, %p81_p0  ;;  %p494_p6 = por %p88_p4, %p87_p3 }
   0xa   : > { %p318_p7 = scmp.ge.s32.totalorder %s429_s15, 1  ;;  %p142_p8 = scmp.lt.s32.totalorder %s429_s15, 3 }
   0xc   : > { %p143_p9 = pnand %p318_p7, %p142_p8 }
   0xd   : > { %p169_p10 = scmp.lt.s32.totalorder (!%p143_p9), %s473_s16, 1  ;;  %s160_s4 = sand.u32 (!%p143_p9), 1, %s421_s13  }
   0xe   : > { %146 = sbr.rel (%p143_p9) target bundleno = 266 (0x10a), region = 28  ;;  %s324_s5 = sshll.u32 (!%p143_p9), %s473_s16, 2 }
   0xf   : > { %s319_s6 = sshll.u32 (!%p143_p9), %s160_s4, 2  ;;  %s224_s9 = scalar_lea.hbm (!%p143_p9), %s551_s2, %s324_s5 }
  0x10   : > { %s162_s10 = scalar_lea.vmem (!%p143_p9), [#allocation2], %s319_s6  ;;  %s228_s17 = sshll.u32 (!%p143_p9), %s224_s9, 4  ;;  %s229_s17 = int_to_ptr.hbm [resolvable:$true] %s228_s17 }
  0x11   : > { %s226_s11 = sshll.u32 (!%p143_p9), %s162_s10, 4  ;;  %s431_s19 = smov (!%p143_p9), 96   ;;  %s227_s11 = int_to_ptr.vmem [resolvable:$true] %s226_s11 }
  0x12   : > { %s210_s20 = scalar_lea.sflag (!%p143_p9), [#allocation3], %s160_s4  ;;  %s381_s24 = sshra.s32 (!%p143_p9), %s229_s17, 4  ;;  %s382_s24 = int_to_ptr.hbm [resolvable:$true] %s381_s24 }
  0x13   : > { %v179_v0 = vld [vmem:[%s550_s1] sm:$0xf]  ;;  %vm184_vm0 = vcmask 1043456   ;;  %s505_s26 = scalar_select %p169_p10, %s473_s16, 1  ;;  %vm180_vm1 = vcmask 64512   ;;  %vm202_vm2 = vcmask 257024  }
  0x14   : > { %v186_v1 = vsel %vm184_vm0, %v179_v0, 0  ;;  %s383_s16 = scalar_lea.hbm %s382_s24, 4  ;;  %s387_s28 = scalar_lea.hbm %s551_s2, 8 }
  0x15   : > { %195 = vmatpush.bf16.msra.mxu0 %v186_v1  ;;  %s320_s27 = sshll.u32 %s505_s26, 2  ;;  %p384_p11 = scmp.ne.s32.totalorder %s382_s24, %s383_s16 }
  0x16   : > { %s172_s30 = scalar_lea.vmem %s549_s0, %s320_s27  ;;  %p388_p0 = scmp.lt.s32.totalorder %s382_s24, %s551_s2 }
  0x17   : > { %v178_v2 = vld [vmem:[%s172_s30] sm:$0xf]  ;;  %p385_p12 = pnand %p384_p11, %p490_p5  ;;  %p389_p1 = scmp.lt.s32.totalorder %s387_s28, %s383_s16 }
  0x18   : > { %322 = vmatmul.msk.bf16.vlgmr.msra.gmra.mxu0 %vm180_vm1, %v178_v2 }
  0x19   : > { %p386_p13 = pneg %p385_p12  ;;  %p390_p2 = por %p389_p1, %p388_p0 }
  0x1b   : > { %p391_p3 = pnand %p390_p2, %p386_p13 }
  0x95   : > { %v197_v3 = vpop.f32.mrf.mxu0 }
  0x96   : > { %v201_v4 = vpack.c.bf16 %v197_v3, %v197_v3  ;;  %205 = vrot.lane.b32.xlu0 %v197_v3, %s431_s19 }
  0x98   : > { %203 = vst.msk [vmem:[%s162_s10] sm:$0xf] %vm202_vm2, %v201_v4 }
  0x99   : > { %394 = shalt.err (!%p391_p3)
}
  0x9a   : > { %327 = dma.vmem_to_hbm [thread:$0]  (%p490_p5), %s227_s11, 64, %s229_s17, %s210_s20  }
  0x9b   : > { %s321_s4 = sshll.u32 %s505_s26, 3 }
  0x9c   : > { %s176_s7 = scalar_lea.vmem %s552_s3, %s321_s4 }
  0x9d   : > { %v199_v5 = vpop.f32.mrf.mxu0 }
 0x108   : > { %v206_v6 = vpop.permute.xlu0 %205 }
 0x109   : > { %208 = vst.msk [vmem:[%s176_s7] sm:$0xff] %vm180_vm1, %v206_v6 }
 0x10a PF: > { %p333_p4 = scmp.ge.s32.totalorder %s429_s15, 2  ;;  %s243_s8 = sand.u32 1, %s417_s12  }
 0x10b   : > { %s244_s22 = scalar_lea.sflag [#allocation3], %s243_s8 }
 0x10c   : > { %p330_p7 = pnand %p333_p4, %p494_p6 }
 0x10e   : > { %p331_p8 = pneg %p330_p7 }
 0x110   : > { %412 = dma.done.wait (%p331_p8), %s244_s22, 64  }
 0x111   : > { %414 = vsyncadd (%p331_p8), %s244_s22, 4294967232  ;;  %p14_p5 = scmp.ge.s32.totalorder %s477_s18, 4   ;;  %s555_s12 = smov %s421_s13 }
 0x112   : > { %s556_s13 = smov %s425_s14  ;;  %s557_s14 = smov %s488_s21 }
 0x113   : > { %s558_s15 = smov %s477_s18  ;;  %16 = sbr.rel (!%p14_p5) target bundleno = 3 (0x3), region = 75 }
 0x118   :  { %257 = vsyncpa [#allocation3], 1 }
 0x119   :  { %259 = vsyncpa [#allocation3 + $0x1], 1 }

</bundles_post_ra>
